<compile_context>
chip_gen: v7x
topology: tpu7x:2x2x1
jax: 0.10.0
libtpu: 0.0.40
codegen_flags: <defaults>
</compile_context>

<pallas_src>
from functools import partial

import jax
import jax.numpy as jnp
import numpy as np
from jax.experimental import pallas as pl
from jax.experimental.pallas import tpu as pltpu

_MIN_PIPELINE_STEPS = 8  # target >= ~4 grid steps per TensorCore on a 2-TC chip
_CAPS = {}               # one-time cached hardware / lowering capabilities


def _round_up(n, m):
    return (n + m - 1) // m * m


def _vmem_capacity_bytes():
    """Per-core VMEM capacity (generation-aware); conservative 64 MiB fallback."""
    if "vmem_cap" not in _CAPS:
        cap = 64 << 20  # v7x per-TC size; safe lower bound for v5e/v6e too
        try:
            cap = int(pltpu.get_tpu_info().vmem_capacity_bytes)
        except Exception:
            pass
        _CAPS["vmem_cap"] = cap
    return _CAPS["vmem_cap"]


def _capabilities():
    """One-time cached probes (tiny AOT compiles, cannot OOM):
      - single-buffered resident weights via pipeline_mode=pl.Buffered(1)
      - pltpu.CORE_PARALLEL dimension semantics (probed together with Buffered(1)
        so the combination used by the real kernel is what gets verified).
    The real forward kernel never wraps compilation in try/except, so genuine
    lowering / VMEM errors there surface loudly."""
    if "caps" in _CAPS:
        return _CAPS["caps"]

    def _probe(use_buffered, use_core_parallel):
        def k(x_ref, w_ref, o_ref):
            o_ref[...] = jnp.dot(x_ref[...], w_ref[...],
                                 preferred_element_type=jnp.float32)

        wkw = {"pipeline_mode": pl.Buffered(1)} if use_buffered else {}
        sem = (pltpu.CORE_PARALLEL,) if use_core_parallel else ("parallel",)
        fn = pl.pallas_call(
            k,
            out_shape=jax.ShapeDtypeStruct((16, 128), jnp.float32),
            grid=(2,),
            in_specs=[pl.BlockSpec((8, 128), lambda i: (i, 0)),
                      pl.BlockSpec((128, 128), lambda i: (0, 0), **wkw)],
            out_specs=pl.BlockSpec((8, 128), lambda i: (i, 0)),
            compiler_params=pltpu.CompilerParams(dimension_semantics=sem),
        )
        jax.jit(fn).lower(
            jax.ShapeDtypeStruct((16, 128), jnp.float32),
            jax.ShapeDtypeStruct((128, 128), jnp.float32),
        ).compile()

    buffered_ok = True
    try:
        _probe(True, False)
    except Exception:
        buffered_ok = False

    core_parallel_ok = hasattr(pltpu, "CORE_PARALLEL")
    if core_parallel_ok:
        try:
            _probe(buffered_ok, True)
        except Exception:
            core_parallel_ok = False

    _CAPS["caps"] = (buffered_ok, core_parallel_ok)
    return _CAPS["caps"]


# --------------------------------------------------------------------------- kernel


def _chain(x, w1, b1, w2, b2, out_dtype):
    """One batch sub-tile: ReLU(x @ W1 + b1) @ W2 + b2, f32 MXU accumulation."""
    cdt = w1.dtype
    h = jnp.dot(x.astype(cdt), w1, preferred_element_type=jnp.float32)
    # Bias + ReLU epilogue in the compute dtype (packed bf16 VPU on v6e/v7x).
    h = jnp.maximum(h.astype(cdt) + b1, 0.0)
    z = jnp.dot(h, w2, preferred_element_type=jnp.float32)
    return (z + b2).astype(out_dtype)


def _projector_kernel_single(x_ref, w1_ref, b1_ref, w2_ref, b2_ref, o_ref):
    o_ref[...] = _chain(x_ref[...], w1_ref[...], b1_ref[...],
                        w2_ref[...], b2_ref[...], o_ref.dtype)


def _projector_kernel_split2(x_ref, w1_ref, b1_ref, w2_ref, b2_ref, o_ref):
    # Two independent batch sub-tiles in one basic block: the VLIW scheduler can
    # co-issue matmul1 of sub-tile 1 with the VPU epilogue + matmul2 of sub-tile 0,
    # filling MXU bubbles on v6e/v7x.
    w1 = w1_ref[...]
    b1 = b1_ref[...]
    w2 = w2_ref[...]
    b2 = b2_ref[...]
    half = o_ref.shape[0] // 2
    o_ref[:half, :] = _chain(x_ref[:half, :], w1, b1, w2, b2, o_ref.dtype)
    o_ref[half:, :] = _chain(x_ref[half:, :], w1, b1, w2, b2, o_ref.dtype)


@partial(jax.jit, static_argnames=("block_b", "out_cols", "out_dtype",
                                   "single_buffer_weights", "core_parallel"))
def _moco_forward(x, w1, b1, w2, b2, *, block_b, out_cols, out_dtype,
                  single_buffer_weights, core_parallel):
    B, D_p = x.shape
    O_p = w2.shape[1]
    num_steps = pl.cdiv(B, block_b)
    split = block_b >= 32 and block_b % 32 == 0
    kernel = _projector_kernel_split2 if split else _projector_kernel_single

    cdt_size = np.dtype(w1.dtype).itemsize
    x_size = np.dtype(x.dtype).itemsize
    out_size = np.dtype(out_dtype).itemsize

    # ---- VMEM budget (generation-aware) -------------------------------------
    weight_copies = 1 if single_buffer_weights else 2
    weight_bytes = weight_copies * ((D_p * D_p + D_p * O_p) * cdt_size
                                    + D_p * cdt_size + O_p * 4)
    stream_bytes = 2 * block_b * (D_p * x_size + O_p * out_size)   # double-buffered x/out tiles
    live_bytes = block_b * (D_p + O_p) * 4 + block_b * D_p * cdt_size  # f32 accs + hidden
    need = weight_bytes + stream_bytes + live_bytes
    cap = _vmem_capacity_bytes()
    vmem_limit = int(max(16 << 20, min(int(1.5 * need) + (2 << 20), int(0.85 * cap))))
    # TODO(synk): when resident weights approach ~0.5*cap (hit at roughly half the
    # input_dim on v7x's 64 MiB VMEM vs v6e), add a trailing "arbitrary" K grid axis
    # (tk ~ 512-1024) with an f32 accumulator scratch instead of shrinking block_b.

    wkw = {"pipeline_mode": pl.Buffered(1)} if single_buffer_weights else {}
    # TODO(synk): if Buffered(1) is unavailable, an explicit resident-weight path
    # (memory_space=pl.ANY + one-shot DMA into VMEM scratch) would avoid the 2x
    # weight footprint of the default double-buffered fallback used here.
    in_specs = [
        pl.BlockSpec((block_b, D_p), lambda i: (i, 0)),        # x tile (streamed)
        pl.BlockSpec((D_p, D_p), lambda i: (0, 0), **wkw),     # W1 (resident)
        pl.BlockSpec((1, D_p), lambda i: (0, 0), **wkw),       # b1 (resident)
        pl.BlockSpec((D_p, O_p), lambda i: (0, 0), **wkw),     # W2 (resident)
        pl.BlockSpec((1, O_p), lambda i: (0, 0), **wkw),       # b2 (resident)
    ]
    out_specs = pl.BlockSpec((block_b, O_p), lambda i: (i, 0))

    sem = (pltpu.CORE_PARALLEL,) if core_parallel else ("parallel",)

    cost = pl.CostEstimate(
        flops=2 * num_steps * block_b * D_p * (D_p + O_p),
        transcendentals=0,
        bytes_accessed=(x.size * x_size
                        + (D_p * D_p + D_p * O_p) * cdt_size + D_p * cdt_size + O_p * 4
                        + B * O_p * out_size),
    )

    out = pl.pallas_call(
        kernel,
        out_shape=jax.ShapeDtypeStruct((B, O_p), out_dtype),
        grid=(num_steps,),
        in_specs=in_specs,
        out_specs=out_specs,
        compiler_params=pltpu.CompilerParams(
            dimension_semantics=sem,
            vmem_limit_bytes=vmem_limit,
        ),
        cost_estimate=cost,
    )(x, w1, b1, w2, b2)

    if out_cols != O_p:
        out = out[:, :out_cols]   # only when out_dim is not a multiple of 128
    return out


# --------------------------------------------------------------------------- wrapper


def prepare_moco_projector_params(w1, b1, w2, b2, *, compute_dtype=jnp.bfloat16):
    """Cast + zero-pad the projector weights ONCE (hoisted out of the forward path).

    Layout: w1 [D, D] and w2 [D, O] are (in, out), i.e. already transposed vs
    PyTorch nn.Linear's [out, in] weight. b1 is stored in compute_dtype so the
    bias+ReLU epilogue runs packed; b2 stays f32 (added to the f32 accumulator).

    compute_dtype=bfloat16 (default fast path for v6e/v7x) changes numerics vs the
    f32 PyTorch module by ~1e-2 relative; use jnp.float32 for near-exact results.
    """
    D, D2 = w1.shape
    O = w2.shape[1]
    assert D == D2 and b1.shape == (D,) and w2.shape == (D, O) and b2.shape == (O,)
    D_p = _round_up(D, 128)
    O_p = _round_up(O, 128)
    w1c = jnp.pad(jnp.asarray(w1, compute_dtype), ((0, D_p - D), (0, D_p - D)))
    w2c = jnp.pad(jnp.asarray(w2, compute_dtype), ((0, D_p - D), (0, O_p - O)))
    b1c = jnp.pad(jnp.asarray(b1, compute_dtype), (0, D_p - D)).reshape(1, D_p)
    b2c = jnp.pad(jnp.asarray(b2, jnp.float32), (0, O_p - O)).reshape(1, O_p)
    return {"w1": w1c, "b1": b1c, "w2": w2c, "b2": b2c,
            "in_dim": int(D), "out_dim": int(O),
            "compute_dtype": np.dtype(compute_dtype)}


def moco_projector_apply(params, x, *, block_b=None, out_dtype=None):
    """Forward pass. x: [..., in_dim]; returns [..., out_dim] in out_dtype (default x.dtype)."""
    w1, b1, w2, b2 = params["w1"], params["b1"], params["w2"], params["b2"]
    D, O = params["in_dim"], params["out_dim"]
    D_p, O_p = w1.shape[0], w2.shape[1]

    orig_shape = x.shape
    if x.ndim != 2:
        x = x.reshape(-1, orig_shape[-1])
    B = x.shape[0]
    assert x.shape[1] == D, f"expected input dim {D}, got {x.shape[1]}"
    if D_p != D:
        # Rare path (input_dim not a multiple of 128): one zero-pad copy of x.
        x = jnp.pad(x, ((0, 0), (0, D_p - D)))

    out_dtype = np.dtype(x.dtype if out_dtype is None else out_dtype)

    if block_b is None:
        base = 256 if params["compute_dtype"].itemsize <= 2 else 128
        block_b = max(128, min(base, _round_up(pl.cdiv(max(B, 1), _MIN_PIPELINE_STEPS), 128)))
    block_b = int(min(block_b, B))          # never exceed the batch (block == full dim is legal)

    num_steps = pl.cdiv(B, block_b)
    single_buf, core_par_ok = _capabilities()
    core_parallel = bool(core_par_ok and num_steps >= 2 and num_steps % 2 == 0)

    out = _moco_forward(x, w1, b1, w2, b2,
                        block_b=block_b, out_cols=O, out_dtype=out_dtype,
                        single_buffer_weights=single_buf, core_parallel=core_parallel)

    if len(orig_shape) != 2:
        out = out.reshape(*orig_shape[:-1], O)
    return out


class MoCoProjectorTPU:
    """Linear(D, D) -> ReLU -> Linear(D, out_dim), fused into one Pallas TPU kernel.
    Weights are cast/padded once at construction; __call__ does no per-call weight work."""

    def __init__(self, w1, b1, w2, b2, *, compute_dtype=jnp.bfloat16):
        self.params = prepare_moco_projector_params(w1, b1, w2, b2,
                                                    compute_dtype=compute_dtype)
        self.out_dim = self.params["out_dim"]

    def __call__(self, x, *, block_b=None, out_dtype=None):
        return moco_projector_apply(self.params, x, block_b=block_b, out_dtype=out_dtype)


def init_moco_projector_params(key, input_dim, out_dim=128, dtype=jnp.float32):
    """PyTorch nn.Linear default init (uniform +/- 1/sqrt(fan_in)); weights are
    returned already transposed to [in, out]."""
    k1, k2, k3, k4 = jax.random.split(key, 4)
    bound = 1.0 / jnp.sqrt(input_dim)
    w1 = jax.random.uniform(k1, (input_dim, input_dim), dtype, -bound, bound)
    b1 = jax.random.uniform(k2, (input_dim,), dtype, -bound, bound)
    w2 = jax.random.uniform(k3, (input_dim, out_dim), dtype, -bound, bound)
    b2 = jax.random.uniform(k4, (out_dim,), dtype, -bound, bound)
    return w1, b1, w2, b2


if __name__ == "__main__":
    B = 200            # NOT a multiple of the tile -> exercises the masked partial last tile
    input_dim = 256
    out_dim = 128

    key = jax.random.PRNGKey(0)
    kx, kp = jax.random.split(key)
    x = jax.random.normal(kx, (B, input_dim), jnp.float32)
    w1, b1, w2, b2 = init_moco_projector_params(kp, input_dim, out_dim)

    # Pure-JAX reference (same math as the PyTorch module's forward).
    hp = jax.lax.Precision.HIGHEST
    h_ref = jnp.maximum(jnp.dot(x, w1, precision=hp) + b1, 0.0)
    z_ref = jnp.dot(h_ref, w2, precision=hp) + b2

    # f32 compute path: tight tolerance.
    proj_f32 = MoCoProjectorTPU(w1, b1, w2, b2, compute_dtype=jnp.float32)
    z_f32 = proj_f32(x)
    jax.block_until_ready(z_f32)
    assert z_f32.shape == (B, out_dim)
    assert jnp.allclose(z_f32, z_ref, atol=1e-4, rtol=1e-4), \
        float(jnp.max(jnp.abs(z_f32 - z_ref)))

    # bf16 fast path (default; documented numerics delta vs the f32 module).
    proj_bf16 = MoCoProjectorTPU(w1, b1, w2, b2)
    z_bf16 = proj_bf16(x)
    jax.block_until_ready(z_bf16)
    assert z_bf16.shape == (B, out_dim)
    assert jnp.allclose(z_bf16, z_ref, atol=5e-2, rtol=5e-2), \
        float(jnp.max(jnp.abs(z_bf16 - z_ref)))

    # Second call reuses the cached padded weights and the jit/pallas compile cache.
    z2 = proj_bf16(x)
    jax.block_until_ready(z2)
    assert jnp.allclose(z2, z_bf16)

    print("KERNEL_OK")
</pallas_src>

<mosaic_0001>
module attributes {stable_mosaic.version = 11 : i64} {
  func.func @_projector_kernel_split2(%arg0: i32, %arg1: memref<128x256xf32, #tpu.memory_space<vmem>>, %arg2: memref<256x256xf32, #tpu.memory_space<vmem>>, %arg3: memref<1x256xf32, #tpu.memory_space<vmem>>, %arg4: memref<256x128xf32, #tpu.memory_space<vmem>>, %arg5: memref<1x128xf32, #tpu.memory_space<vmem>>, %arg6: memref<128x128xf32, #tpu.memory_space<vmem>>) attributes {dimension_semantics = [#tpu.dimension_semantics<parallel>], iteration_bounds = array<i64: 2>, scalar_prefetch = 0 : i64, scratch_operands = 0 : i64, tpu.core_type = #tpu.core_type<tc>, window_params = [{transform_indices = @transform_0, window_bounds = array<i64: 128, 256>}, {pipeline_mode = #tpu.pipeline_mode<synchronous>, transform_indices = @transform_1, window_bounds = array<i64: 256, 256>}, {pipeline_mode = #tpu.pipeline_mode<synchronous>, transform_indices = @transform_2, window_bounds = array<i64: 1, 256>}, {pipeline_mode = #tpu.pipeline_mode<synchronous>, transform_indices = @transform_3, window_bounds = array<i64: 256, 128>}, {pipeline_mode = #tpu.pipeline_mode<synchronous>, transform_indices = @transform_4, window_bounds = array<i64: 1, 128>}, {transform_indices = @transform_5, window_bounds = array<i64: 128, 128>}]} {
    %c0 = arith.constant 0 : index
    %c0_0 = arith.constant 0 : index
    %0 = vector.load %arg2[%c0, %c0_0] : memref<256x256xf32, #tpu.memory_space<vmem>>, vector<256x256xf32>
    %c0_1 = arith.constant 0 : index
    %c0_2 = arith.constant 0 : index
    %1 = vector.load %arg3[%c0_1, %c0_2] : memref<1x256xf32, #tpu.memory_space<vmem>>, vector<1x256xf32>
    %c0_3 = arith.constant 0 : index
    %c0_4 = arith.constant 0 : index
    %2 = vector.load %arg4[%c0_3, %c0_4] : memref<256x128xf32, #tpu.memory_space<vmem>>, vector<256x128xf32>
    %c0_5 = arith.constant 0 : index
    %c0_6 = arith.constant 0 : index
    %3 = vector.load %arg5[%c0_5, %c0_6] : memref<1x128xf32, #tpu.memory_space<vmem>>, vector<1x128xf32>
    %c0_7 = arith.constant 0 : index
    %c0_8 = arith.constant 0 : index
    %4 = vector.load %arg1[%c0_7, %c0_8] : memref<128x256xf32, #tpu.memory_space<vmem>>, vector<64x256xf32>
    %cst = arith.constant dense<0.000000e+00> : vector<64x256xf32>
    %5 = tpu.matmul %4, %0, %cst {dimension_numbers = #tpu.dot_dimension_numbers<[1], [0], [0], [1], [0, 0, 1, 1], [], []>} : vector<64x256xf32>, vector<256x256xf32>, vector<64x256xf32> -> vector<64x256xf32>
    %6 = vector.broadcast %1 : vector<1x256xf32> to vector<64x256xf32>
    %7 = arith.addf %5, %6 : vector<64x256xf32>
    %cst_9 = arith.constant 0.000000e+00 : f32
    %8 = vector.broadcast %cst_9 : f32 to vector<64x256xf32>
    %9 = arith.maximumf %7, %8 : vector<64x256xf32>
    %cst_10 = arith.constant dense<0.000000e+00> : vector<64x128xf32>
    %10 = tpu.matmul %9, %2, %cst_10 {dimension_numbers = #tpu.dot_dimension_numbers<[1], [0], [0], [1], [0, 0, 1, 1], [], []>} : vector<64x256xf32>, vector<256x128xf32>, vector<64x128xf32> -> vector<64x128xf32>
    %11 = vector.broadcast %3 : vector<1x128xf32> to vector<64x128xf32>
    %12 = arith.addf %10, %11 : vector<64x128xf32>
    %c0_11 = arith.constant 0 : index
    %c0_12 = arith.constant 0 : index
    %13 = vector.load %arg6[%c0_11, %c0_12] : memref<128x128xf32, #tpu.memory_space<vmem>>, vector<64x128xf32>
    tpu.vector_store %arg6[%c0_11, %c0_12], %12 {strides = array<i32>} : memref<128x128xf32, #tpu.memory_space<vmem>>, vector<64x128xf32>,
    %c64 = arith.constant 64 : index
    %c0_13 = arith.constant 0 : index
    %14 = vector.load %arg1[%c64, %c0_13] : memref<128x256xf32, #tpu.memory_space<vmem>>, vector<64x256xf32>
    %cst_14 = arith.constant dense<0.000000e+00> : vector<64x256xf32>
    %15 = tpu.matmul %14, %0, %cst_14 {dimension_numbers = #tpu.dot_dimension_numbers<[1], [0], [0], [1], [0, 0, 1, 1], [], []>} : vector<64x256xf32>, vector<256x256xf32>, vector<64x256xf32> -> vector<64x256xf32>
    %16 = vector.broadcast %1 : vector<1x256xf32> to vector<64x256xf32>
    %17 = arith.addf %15, %16 : vector<64x256xf32>
    %cst_15 = arith.constant 0.000000e+00 : f32
    %18 = vector.broadcast %cst_15 : f32 to vector<64x256xf32>
    %19 = arith.maximumf %17, %18 : vector<64x256xf32>
    %cst_16 = arith.constant dense<0.000000e+00> : vector<64x128xf32>
    %20 = tpu.matmul %19, %2, %cst_16 {dimension_numbers = #tpu.dot_dimension_numbers<[1], [0], [0], [1], [0, 0, 1, 1], [], []>} : vector<64x256xf32>, vector<256x128xf32>, vector<64x128xf32> -> vector<64x128xf32>
    %21 = vector.broadcast %3 : vector<1x128xf32> to vector<64x128xf32>
    %22 = arith.addf %20, %21 : vector<64x128xf32>
    %c64_17 = arith.constant 64 : index
    %c0_18 = arith.constant 0 : index
    %23 = vector.load %arg6[%c64_17, %c0_18] : memref<128x128xf32, #tpu.memory_space<vmem>>, vector<64x128xf32>
    tpu.vector_store %arg6[%c64_17, %c0_18], %22 {strides = array<i32>} : memref<128x128xf32, #tpu.memory_space<vmem>>, vector<64x128xf32>,
    return
  }
  func.func @transform_0(%arg0: i32) -> (i32, i32) {
    %c0_i32 = arith.constant 0 : i32
    %c0_i32_0 = arith.constant 0 : i32
    return %arg0, %c0_i32 : i32, i32
  }
  func.func @transform_1(%arg0: i32) -> (i32, i32) {
    %c0_i32 = arith.constant 0 : i32
    %c0_i32_0 = arith.constant 0 : i32
    %c0_i32_1 = arith.constant 0 : i32
    return %c0_i32, %c0_i32_0 : i32, i32
  }
  func.func @transform_2(%arg0: i32) -> (i32, i32) {
    %c0_i32 = arith.constant 0 : i32
    %c0_i32_0 = arith.constant 0 : i32
    %c0_i32_1 = arith.constant 0 : i32
    return %c0_i32, %c0_i32_0 : i32, i32
  }
  func.func @transform_3(%arg0: i32) -> (i32, i32) {
    %c0_i32 = arith.constant 0 : i32
    %c0_i32_0 = arith.constant 0 : i32
    %c0_i32_1 = arith.constant 0 : i32
    return %c0_i32, %c0_i32_0 : i32, i32
  }
  func.func @transform_4(%arg0: i32) -> (i32, i32) {
    %c0_i32 = arith.constant 0 : i32
    %c0_i32_0 = arith.constant 0 : i32
    %c0_i32_1 = arith.constant 0 : i32
    return %c0_i32, %c0_i32_0 : i32, i32
  }
  func.func @transform_5(%arg0: i32) -> (i32, i32) {
    %c0_i32 = arith.constant 0 : i32
    %c0_i32_0 = arith.constant 0 : i32
    return %arg0, %c0_i32 : i32, i32
  }
}

</mosaic_0001>

<bundles_post_ra>
// kernel: _moco_forward.1
= control target key start
LH: loop header
LB: loop body
LE: loop exit
PB: predicated region body
PF: predicated region fallthrough
CT: control target
= control target key end

     0   :  { %10 = vsyncpa [#allocation3], 0  ;;  %s2176_s0 = inlined_call_operand.hbm [shape: f32[200,256], index: 0, kind: input, shape index: {}]   ;;  %s2177_s1 = inlined_call_operand.hbm [shape: f32[256,256], index: 1, kind: input, shape index: {}]   ;;  %s2178_s2 = inlined_call_operand.vmem [shape: f32[1,256], index: 2, kind: input, shape index: {}]   ;;  %s2179_s3 = inlined_call_operand.hbm [shape: f32[256,128], index: 3, kind: input, shape index: {}]   ;;  %s2180_s4 = inlined_call_operand.vmem [shape: f32[1,128], index: 4, kind: input, shape index: {}]   ;;  %s2181_s5 = inlined_call_operand.hbm [shape: f32[200,128], index: 5, kind: output, shape index: {}]  }
   0x1   :  { %12 = vsyncpa [#allocation3 + $0x1], 0 }
   0x2   :  { %13 = vsyncpa [#allocation6], 0 }
   0x3   :  { %14 = vsyncpa [#allocation4], 0 }
   0x4   :  { %16 = vsyncpa [#allocation4 + $0x1], 0  ;;  %s1637_s18 = smov 0   ;;  %s1639_s19 = smov 0  }
   0x5   :  { %s1641_s20 = smov 0   ;;  %s1643_s21 = smov 0  }
   0x6 LB: > { %s1658_s22 = sadd.s32 4294967295, %s1593_s21   ;;  %s1034_s23 = sadd.s32 4294967294, %s1593_s21   ;;  %s1593_s21 = sphi %s1643_s21, %s2203_s21   ;;  %s1589_s20 = sphi %s1641_s20, %s2202_s20   ;;  %s1585_s19 = sphi %s1639_s19, %s2201_s19   ;;  %s1581_s18 = sphi %s1637_s18, %s2200_s18  }
   0x7   : > { %s1662_s24 = sadd.s32 1, %s1593_s21   ;;  %s29_s25 = sadd.s32 1, %s1589_s20 }
   0x8   : > { %s26_s26 = ssub.s32 %s1593_s21, %s1662_s24  ;;  %p36_p0 = scmp.ne.s32.totalorder %s1589_s20, %s1585_s19 }
   0x9   : > { %p27_p1 = scmp.eq.s32.totalorder %s26_s26, 0  ;;  %p37_p2 = scmp.eq.s32.totalorder %s1593_s21, 0 }
   0xa   : > { %p42_p3 = scmp.ne.s32.totalorder %s1585_s19, %s1581_s18  ;;  %p2182_p4 = scmp.eq.s32.totalorder %s1658_s22, 0 }
   0xb   : > { %s1674_s27 = scalar_select %p27_p1, %s1589_s20, %s29_s25  }
   0xc   : > { %p1676_p5 = por %p37_p2, %p36_p0  ;;  %p1682_p6 = por %p2182_p4, %p42_p3 }
   0xd   : > { %2185 = sst [smem:[#allocation12_spill]] %s1674_s27  ;;  %p150_p7 = scmp.eq.s32.totalorder %s1658_s22, 1 }
   0xe   : > { %s2186_s28 = scalar_select %p1676_p5, 1, 0 }
   0xf   : > { %s2187_s29 = scalar_select %p1682_p6, 1, 0 }
  0x10   : > { %p156_p8 = scmp.eq.s32.totalorder %s1034_s23, 1  ;;  %p1035_p9 = scmp.ge.s32.totalorder %s1593_s21, 1 }
  0x11   : > { %p163_p10 = scmp.lt.s32.totalorder %s1593_s21, 3  ;;  %p1689_p11 = por %p150_p7, %p36_p0 }
  0x12   : > { %p1693_p12 = por %p156_p8, %p42_p3  ;;  %s1595_s8 = smov [#allocation5]  }
  0x13   : > { %s2188_s30 = scalar_select %p1689_p11, 1, 0 }
  0x14   : > { %s2189_s6 = scalar_select %p1693_p12, 1, 0 }
  0x15   : > { %p1697_p13 = pnand %p1035_p9, %p163_p10  ;;  %s175_s9 = sshll.u32 %s1595_s8, 4  ;;  %s176_s9 = int_to_ptr.vmem [resolvable:$true] %s175_s9 }
  0x16   : > { %s1596_s11 = smov [#allocation7]   ;;  %s1439_s15 = scalar_lea.hbm %s2177_s1, 8192 }
  0x17   : > { %s2190_s7 = scalar_select %p1697_p13, 1, 0 }
  0x18   : > { %p1381_p1 = pneg %p1697_p13  ;;  %s191_s12 = sshll.u32 %s1596_s11, 4  ;;  %s1709_s12 = int_to_ptr.vmem [resolvable:$true] %s191_s12 }
  0x19   : > { %p1440_p0 = scmp.ne.s32.totalorder %s2177_s1, %s1439_s15  ;;  %p1446_p9 = scmp.lt.u32.totalorder %s1439_s15, %s2177_s1 }
  0x1a   : > { %p1705_p2 = pnand %p1381_p1, %p2182_p4 }
  0x1c   : > { %p1441_p3 = pneg %p1705_p2 }
  0x1e   : > { %p1442_p7 = pnand %p1441_p3, %p1440_p0 }
  0x20   : > { %p1443_p8 = pneg %p1442_p7 }
  0x22   : > { %p1448_p10 = pnand %p1446_p9, %p1443_p8 }
  0x24   : > { %1451 = shalt.err (!%p1448_p10)
}
  0x25   : > { %s1452_s26 = scalar_lea.vmem %s176_s9, 8192  ;;  %p1460_p11 = scmp.lt.s32.totalorder %s176_s9, %s176_s9 }
  0x26   : > { %p1453_p1 = scmp.ne.s32.totalorder %s176_s9, %s1452_s26  ;;  %p1461_p6 = scmp.lt.s32.totalorder %s1452_s26, %s1452_s26 }
  0x28   : > { %p1455_p4 = pnand %p1453_p1, %p1441_p3  ;;  %p1462_p13 = por %p1461_p6, %p1460_p11 }
  0x2a   : > { %p1456_p12 = pneg %p1455_p4 }
  0x2c   : > { %p1463_p5 = pnand %p1462_p13, %p1456_p12 }
  0x2e   : > { %1466 = shalt.err (!%p1463_p5)
}
  0x2f   : > { %s1597_s8 = smov 256   ;;  %s1598_s11 = smov 16  }
  0x30   : > { %1384 = dma.hbm_to_vmem [thread:$0]  (!%p1705_p2), %s2177_s1, 8192, %s176_s9, [#allocation6], %s1597_s8, %s1597_s8, %s1598_s11  }
  0x31   : > { %s1467_s17 = scalar_lea.hbm %s2179_s3, 4096 }
  0x32   : > { %p1468_p4 = scmp.ne.s32.totalorder %s2179_s3, %s1467_s17  ;;  %p1474_p11 = scmp.lt.u32.totalorder %s1467_s17, %s2179_s3 }
  0x34   : > { %p1470_p5 = pnand %p1468_p4, %p1441_p3 }
  0x36   : > { %p1471_p6 = pneg %p1470_p5 }
  0x38   : > { %p1476_p12 = pnand %p1474_p11, %p1471_p6 }
  0x3a   : > { %1479 = shalt.err (!%p1476_p12)
}
  0x3b   : > { %s1480_s9 = scalar_lea.vmem %s1709_s12, 4096  ;;  %p1488_p8 = scmp.lt.s32.totalorder %s1709_s12, %s1709_s12 }
  0x3c   : > { %p1481_p13 = scmp.ne.s32.totalorder %s1709_s12, %s1480_s9  ;;  %p1489_p9 = scmp.lt.s32.totalorder %s1480_s9, %s1480_s9 }
  0x3e   : > { %p1483_p0 = pnand %p1481_p13, %p1441_p3  ;;  %p1490_p10 = por %p1489_p9, %p1488_p8 }
  0x40   : > { %p1484_p7 = pneg %p1483_p0 }
  0x42   : > { %p1491_p1 = pnand %p1490_p10, %p1484_p7 }
  0x44   : > { %1494 = shalt.err (!%p1491_p1)
}
  0x45   : > { %s1599_s27 = smov 128   ;;  %s1600_s8 = smov 8  }
  0x46   : > { %1387 = dma.hbm_to_vmem [thread:$0]  (!%p1705_p2), %s2179_s3, 4096, %s1709_s12, [#allocation6], %s1599_s27, %s1599_s27, %s1600_s8  }
  0x47   : > { %p1038_p4 = scmp.ge.s32.totalorder %s1593_s21, 2 }
  0x48   : > { %p2192_p3 = scmp.ne.s32.totalorder (!%p1038_p4), %s2186_s28, 0 }
  0x49   : > { %204 = sbr.rel (%p1038_p4) target bundleno = 115 (0x73), region = 32 }
  0x50   : > { %207 = sbr.rel (!%p2192_p3) target bundleno = 115 (0x73), region = 36  ;;  %s208_s14 = sand.u32 (%p2192_p3), 1, %s1589_s20  }
  0x51   : > { %s1040_s15 = sshll.u32 (%p2192_p3), %s1593_s21, 4  ;;  %s1039_s16 = sshll.u32 (%p2192_p3), %s208_s14, 8 }
  0x52   : > { %s214_s17 = ssub.s32 (%p2192_p3), 25, %s1040_s15  ;;  %s1768_s23 = scalar_lea.sflag (%p2192_p3), [#allocation3], %s208_s14 }
  0x53   : > { %p215_p5 = scmp.lt.s32.totalorder (%p2192_p3), %s214_s17, 16  ;;  %s212_s25 = scalar_lea.vmem (%p2192_p3), [#allocation2], %s1039_s16 }
  0x57   : > { %s2205_s17 = smov (!%p215_p5, %s214_s17), 16 }
  0x58   : > { %s1765_s10 = sshll.u32 %s2205_s17, 8 }
  0x59   : > { %s220_s12 = ssub.s32 4096, %s1765_s10 }
  0x5a   : > { %221 = vsyncadd %s1768_s23, %s220_s12  ;;  %p1043_p2 = scmp.ne.s32.totalorder %s1765_s10, 0  ;;  %s1065_s28 = sshll.u32 %s1593_s21, 12 }
  0x5b   : > { %s1776_s27 = scalar_lea.hbm %s2176_s0, %s1065_s28  ;;  %s227_s8 = sshll.u32 %s212_s25, 4  ;;  %s1778_s8 = int_to_ptr.vmem [resolvable:$true] %s227_s8 }
  0x5c   : > { %s1495_s11 = scalar_lea.hbm %s1776_s27, %s1765_s10  ;;  %s1499_s15 = scalar_lea.hbm %s2176_s0, 6400 }
  0x5d   : > { %p1496_p6 = scmp.ne.s32.totalorder %s1776_s27, %s1495_s11  ;;  %p1500_p13 = scmp.lt.u32.totalorder %s1776_s27, %s2176_s0 }
  0x5e   : > { %p1501_p0 = scmp.lt.u32.totalorder %s1499_s15, %s1495_s11  ;;  %p1503_p8 = scmp.lt.u32.totalorder %s1495_s11, %s1776_s27 }
  0x5f   : > { %p1497_p11 = pnand %p1496_p6, %p1043_p2 }
  0x60   : > { %p1502_p7 = por %p1501_p0, %p1500_p13 }
  0x61   : > { %p1498_p12 = pneg %p1497_p11 }
  0x62   : > { %p1504_p9 = por %p1503_p8, %p1502_p7 }
  0x64   : > { %p1505_p10 = pnand %p1504_p9, %p1498_p12 }
  0x66   : > { %1508 = shalt.err (!%p1505_p10)
}
  0x67   : > { %s1509_s12 = scalar_lea.vmem %s1778_s8, %s1765_s10  ;;  %s1601_s25 = smov [#allocation2]  }
  0x68   : > { %p1510_p1 = scmp.ne.s32.totalorder %s1778_s8, %s1509_s12  ;;  %s1513_s28 = sshll.u32 %s1601_s25, 4  ;;  %s1514_s28 = int_to_ptr.vmem [resolvable:$false] %s1513_s28 }
  0x69   : > { %s1515_s26 = scalar_lea.vmem %s1514_s28, 8192  ;;  %p1516_p6 = scmp.lt.s32.totalorder %s1778_s8, %s1514_s28 }
  0x6a   : > { %p1511_p3 = pnand %p1510_p1, %p1043_p2  ;;  %p1517_p11 = scmp.lt.s32.totalorder %s1515_s26, %s1509_s12 }
  0x6c   : > { %p1512_p5 = pneg %p1511_p3  ;;  %p1518_p13 = por %p1517_p11, %p1516_p6 }
  0x6e   : > { %p1519_p0 = pnand %p1518_p13, %p1512_p5 }
  0x70   : > { %1522 = shalt.err (!%p1519_p0)
}
  0x71   : > { %s1602_s9 = smov 256   ;;  %s1603_s11 = smov 16  }
  0x72   : > { %233 = dma.hbm_to_vmem [thread:$0]  (%p1043_p2), %s1776_s27, %s1765_s10, %s1778_s8, %s1768_s23, %s1602_s9, %s1602_s9, %s1603_s11  }
  0x73 PF: > { %p2193_p12 = scmp.ne.s32.totalorder %s2190_s7, 0 }
  0x74   : > { %s1808_s13 = sand.u32 (!%p2193_p12), 1, %s1585_s19   ;;  %p2194_p7 = scmp.ne.s32.totalorder (!%p2193_p12), %s2187_s29, 0 }
  0x75   : > { %239 = sbr.rel (%p2193_p12) target bundleno = 969 (0x3c9), region = 40  ;;  %s1049_s14 = sshll.u32 (!%p2193_p12), %s1808_s13, 8 }
  0x76   : > { %s242_s15 = scalar_lea.sflag (!%p2193_p12), [#allocation3], %s1808_s13  ;;  %s1812_s16 = scalar_lea.vmem (!%p2193_p12), [#allocation2], %s1049_s14 }
  0x7c   : > { %1568 = dma.done.wait (%p2194_p7), %s242_s15, 4096  }
  0x7d   : > { %1570 = vsyncadd (%p2194_p7), %s242_s15, 4294963200  ;;  %p2195_p2 = scmp.eq.s32.totalorder %s1658_s22, 0 }
  0x7f   : > { %1572 = dma.done.wait (%p2195_p2), [#allocation6], 12288   ;;  %p2196_p8 = pmov %p2195_p2 }
  0x80   : > { %v292_v0 = vld [vmem:[#allocation5 + $0x8] sm:$0xff]  ;;  %v294_v1 = vld [vmem:[#allocation5 + $0x18] sm:$0xff]  ;;  %v291_v2 = vld [vmem:[#allocation5] sm:$0xff]  ;;  %s1052_s10 = sshll.u32 %s1808_s13, 7  ;;  %s923_s17 = scalar_lea.sflag [#allocation4], %s1808_s13 }
  0x81   : > { %1574 = vsyncadd (%p2196_p8), [#allocation6], 4294955008  ;;  %v1822_v3 = vpack.c.bf16 %v294_v1, %v292_v0  ;;  %v293_v4 = vld [vmem:[#allocation5 + $0x10] sm:$0xff]  ;;  %v296_v5 = vld [vmem:[#allocation5 + $0x28] sm:$0xff]  ;;  %s2064_s8 = scalar_lea.vmem [#allocation8], %s1052_s10  ;;  %p2197_p9 = scmp.ne.s32.totalorder %s2188_s30, 0 }
  0x82   : > { %v298_v6 = vld [vmem:[#allocation5 + $0x38] sm:$0xff]  ;;  %v1824_v7 = vpack.c.bf16 %v293_v4, %v291_v2  ;;  %v295_v9 = vld [vmem:[#allocation5 + $0x20] sm:$0xff]  ;;  %v297_v10 = vld [vmem:[#allocation5 + $0x30] sm:$0xff]  ;;  %s1055_s12 = sshll.u32 (%p2197_p9), %s1658_s22, 4 }
  0x83   : > { %v1826_v8 = vpack.c.bf16 %v298_v6, %v296_v5  ;;  %v300_v11 = vld [vmem:[#allocation5 + $0x48] sm:$0xff]  ;;  %1180 = vmatprep.subr.bf16.mxu0 %v1822_v3  ;;  %v302_v12 = vld [vmem:[#allocation5 + $0x58] sm:$0xff]  ;;  %v1830_v13 = vpack.c.bf16 %v297_v10, %v295_v9  ;;  %v299_v15 = vld [vmem:[#allocation5 + $0x40] sm:$0xff]  ;;  %s931_s25 = ssub.s32 (%p2197_p9), 25, %s1055_s12 }
  0x84   : > { %1182 = vmatpush1.bf16.msra.mxu0 %v1824_v7  ;;  %v1833_v14 = vpack.c.bf16 %v302_v12, %v300_v11  ;;  %v301_v16 = vld [vmem:[#allocation5 + $0x50] sm:$0xff]  ;;  %v304_v17 = vld [vmem:[#allocation5 + $0x68] sm:$0xff]  ;;  %v306_v18 = vld [vmem:[#allocation5 + $0x78] sm:$0xff]  ;;  %p932_p10 = scmp.lt.s32.totalorder (%p2197_p9), %s931_s25, 16 }
  0x85   : > { %1184 = vmatprep.subr.bf16.mxu0 %v1826_v8  ;;  %v1836_v19 = vpack.c.bf16 %v301_v16, %v299_v15  ;;  %v1839_v20 = vpack.c.bf16 %v306_v18, %v304_v17  ;;  %v303_v21 = vld [vmem:[#allocation5 + $0x60] sm:$0xff]  ;;  %v305_v22 = vld [vmem:[#allocation5 + $0x70] sm:$0xff]  ;;  %v308_v23 = vld [vmem:[#allocation5 + $0x88] sm:$0xff] }
  0x86   : > { %v310_v24 = vld [vmem:[#allocation5 + $0x98] sm:$0xff]  ;;  %v1842_v25 = vpack.c.bf16 %v305_v22, %v303_v21  ;;  %v307_v27 = vld [vmem:[#allocation5 + $0x80] sm:$0xff]  ;;  %v309_v28 = vld [vmem:[#allocation5 + $0x90] sm:$0xff] }
  0x87   : > { %v1845_v26 = vpack.c.bf16 %v310_v24, %v308_v23  ;;  %v312_v29 = vld [vmem:[#allocation5 + $0xa8] sm:$0xff]  ;;  %v314_v30 = vld [vmem:[#allocation5 + $0xb8] sm:$0xff]  ;;  %v1848_v31 = vpack.c.bf16 %v309_v28, %v307_v27  ;;  %v311_v33 = vld [vmem:[#allocation5 + $0xa0] sm:$0xff] }
  0x88   : > { %1186 = vmatpush1.bf16.msra.mxu0 %v1830_v13  ;;  %v1851_v32 = vpack.c.bf16 %v314_v30, %v312_v29  ;;  %v313_v34 = vld [vmem:[#allocation5 + $0xb0] sm:$0xff]  ;;  %v316_v35 = vld [vmem:[#allocation5 + $0xc8] sm:$0xff]  ;;  %v318_v36 = vld [vmem:[#allocation5 + $0xd8] sm:$0xff] }
  0x89   : > { %1188 = vmatprep.subr.bf16.mxu0 %v1833_v14  ;;  %v1854_v37 = vpack.c.bf16 %v313_v34, %v311_v33  ;;  %v1857_v38 = vpack.c.bf16 %v318_v36, %v316_v35  ;;  %v315_v39 = vld [vmem:[#allocation5 + $0xc0] sm:$0xff]  ;;  %v317_v40 = vld [vmem:[#allocation5 + $0xd0] sm:$0xff]  ;;  %v390_v41 = vld [vmem:[%s1812_s16 + $0x8] sm:$0xff] }
  0x8a   : > { %v320_v42 = vld [vmem:[#allocation5 + $0xe8] sm:$0xff]  ;;  %v322_v43 = vld [vmem:[#allocation5 + $0xf8] sm:$0xff]  ;;  %480 = vmatprep.mubr.f32.mxu0 %v390_v41  ;;  %v1861_v44 = vpack.c.bf16 %v317_v40, %v315_v39  ;;  %v319_v46 = vld [vmem:[#allocation5 + $0xe0] sm:$0xff] }
  0x8b   : > { %v1864_v45 = vpack.c.bf16 %v322_v43, %v320_v42  ;;  %v321_v47 = vld [vmem:[#allocation5 + $0xf0] sm:$0xff]  ;;  %v324_v48 = vld [vmem:[#allocation5 + $0x108] sm:$0xff]  ;;  %v326_v49 = vld [vmem:[#allocation5 + $0x118] sm:$0xff] }
  0x8c   : > { %1190 = vmatpush1.bf16.msra.mxu0 %v1836_v19  ;;  %v372_v50 = vld [vmem:[#allocation7 + $0x80] sm:$0xff]  ;;  %v325_v52 = vld [vmem:[#allocation5 + $0x110] sm:$0xff]  ;;  %v373_v53 = vld [vmem:[#allocation7 + $0x88] sm:$0xff]  ;;  %v1867_v56 = vpack.c.bf16 %v321_v47, %v319_v46  ;;  %v1874_v62 = vpack.c.bf16 %v326_v49, %v324_v48 }
  0x8d   : > { %1192 = vmatprep.subr.bf16.mxu0 %v1839_v20  ;;  %v323_v51 = vld [vmem:[#allocation5 + $0x100] sm:$0xff]  ;;  %v357_v55 = vld [vmem:[#allocation7 + $0x8] sm:$0xff]  ;;  %v1869_v57 = vpack.c.bf16 %v373_v53, %v372_v50  ;;  %v374_v59 = vld [vmem:[#allocation7 + $0x90] sm:$0xff] }
  0x8e   : > { %v356_v54 = vld [vmem:[#allocation7] sm:$0xff]  ;;  %v375_v60 = vld [vmem:[#allocation7 + $0x98] sm:$0xff]  ;;  %v358_v61 = vld [vmem:[#allocation7 + $0x10] sm:$0xff]  ;;  %v1883_v9 = vpack.c.bf16 %v325_v52, %v323_v51 }
  0x8f   : > { %v1871_v58 = vpack.c.bf16 %v357_v55, %v356_v54  ;;  %v1876_v63 = vpack.c.bf16 %v375_v60, %v374_v59  ;;  %v359_v0 = vld [vmem:[#allocation7 + $0x18] sm:$0xff]  ;;  %v376_v1 = vld [vmem:[#allocation7 + $0xa0] sm:$0xff]  ;;  %v377_v2 = vld [vmem:[#allocation7 + $0xa8] sm:$0xff]  ;;  %1244 = vmatprep.subr.bf16.mxu1 %v1869_v57 }
  0x90   : > { %1194 = vmatpush1.bf16.msra.mxu0 %v1842_v25  ;;  %v328_v4 = vld [vmem:[#allocation5 + $0x128] sm:$0xff]  ;;  %v330_v5 = vld [vmem:[#allocation5 + $0x138] sm:$0xff]  ;;  %v1880_v6 = vpack.c.bf16 %v359_v0, %v358_v61  ;;  %v327_v10 = vld [vmem:[#allocation5 + $0x120] sm:$0xff]  ;;  %v1886_v11 = vpack.c.bf16 %v377_v2, %v376_v1 }
  0x91   : > { %1196 = vmatprep.subr.bf16.mxu0 %v1845_v26  ;;  %1246 = vmatpush3.bf16.msra.mxu1 %v1871_v58  ;;  %v360_v12 = vld [vmem:[#allocation7 + $0x20] sm:$0xff]  ;;  %v361_v15 = vld [vmem:[#allocation7 + $0x28] sm:$0xff]  ;;  %v1889_v16 = vpack.c.bf16 %v330_v5, %v328_v4  ;;  %v329_v17 = vld [vmem:[#allocation5 + $0x130] sm:$0xff] }
  0x92   : > { %1248 = vmatprep.subr.bf16.mxu1 %v1876_v63  ;;  %v378_v18 = vld [vmem:[#allocation7 + $0xb0] sm:$0xff]  ;;  %v379_v21 = vld [vmem:[#allocation7 + $0xb8] sm:$0xff]  ;;  %v332_v22 = vld [vmem:[#allocation5 + $0x148] sm:$0xff]  ;;  %v1892_v24 = vpack.c.bf16 %v361_v15, %v360_v12  ;;  %v1895_v27 = vpack.c.bf16 %v329_v17, %v327_v10 }
  0x93   : > { %v334_v23 = vld [vmem:[#allocation5 + $0x158] sm:$0xff]  ;;  %v331_v28 = vld [vmem:[#allocation5 + $0x140] sm:$0xff]  ;;  %v1898_v29 = vpack.c.bf16 %v379_v21, %v378_v18  ;;  %v362_v30 = vld [vmem:[#allocation7 + $0x30] sm:$0xff] }
  0x94   : > { %1198 = vmatpush1.bf16.msra.mxu0 %v1848_v31  ;;  %v363_v33 = vld [vmem:[#allocation7 + $0x38] sm:$0xff]  ;;  %v1901_v34 = vpack.c.bf16 %v334_v23, %v332_v22  ;;  %v333_v35 = vld [vmem:[#allocation5 + $0x150] sm:$0xff]  ;;  %v380_v36 = vld [vmem:[#allocation7 + $0xc0] sm:$0xff] }
  0x95   : > { %1200 = vmatprep.subr.bf16.mxu0 %v1851_v32  ;;  %1250 = vmatpush3.bf16.msra.mxu1 %v1880_v6  ;;  %v381_v39 = vld [vmem:[#allocation7 + $0xc8] sm:$0xff]  ;;  %v338_v41 = vld [vmem:[#allocation5 + $0x178] sm:$0xff]  ;;  %v1904_v42 = vpack.c.bf16 %v363_v33, %v362_v30  ;;  %v1907_v43 = vpack.c.bf16 %v333_v35, %v331_v28  ;;  %v335_v46 = vld [vmem:[#allocation5 + $0x160] sm:$0xff] }
  0x96   : > { %1252 = vmatprep.subr.bf16.mxu1 %v1886_v11  ;;  %v336_v40 = vld [vmem:[#allocation5 + $0x168] sm:$0xff]  ;;  %v1910_v47 = vpack.c.bf16 %v381_v39, %v380_v36  ;;  %v364_v48 = vld [vmem:[#allocation7 + $0x40] sm:$0xff]  ;;  %v337_v51 = vld [vmem:[#allocation5 + $0x170] sm:$0xff] }
  0x97   : > { %v365_v49 = vld [vmem:[#allocation7 + $0x48] sm:$0xff]  ;;  %v1913_v50 = vpack.c.bf16 %v338_v41, %v336_v40  ;;  %v382_v52 = vld [vmem:[#allocation7 + $0xd0] sm:$0xff]  ;;  %v383_v53 = vld [vmem:[#allocation7 + $0xd8] sm:$0xff]  ;;  %v1919_v60 = vpack.c.bf16 %v337_v51, %v335_v46 }
  0x98   : > { %1202 = vmatpush1.bf16.msra.mxu0 %v1854_v37  ;;  %v340_v54 = vld [vmem:[#allocation5 + $0x188] sm:$0xff]  ;;  %v342_v55 = vld [vmem:[#allocation5 + $0x198] sm:$0xff]  ;;  %v1916_v59 = vpack.c.bf16 %v365_v49, %v364_v48  ;;  %v339_v61 = vld [vmem:[#allocation5 + $0x180] sm:$0xff]  ;;  %v1922_v0 = vpack.c.bf16 %v383_v53, %v382_v52 }
  0x99   : > { %1204 = vmatprep.subr.bf16.mxu0 %v1857_v38  ;;  %1254 = vmatpush3.bf16.msra.mxu1 %v1892_v24  ;;  %v366_v1 = vld [vmem:[#allocation7 + $0x50] sm:$0xff]  ;;  %v367_v2 = vld [vmem:[#allocation7 + $0x58] sm:$0xff]  ;;  %v1925_v4 = vpack.c.bf16 %v342_v55, %v340_v54  ;;  %v384_v10 = vld [vmem:[#allocation7 + $0xe0] sm:$0xff] }
  0x9a   : > { %1256 = vmatprep.subr.bf16.mxu1 %v1898_v29  ;;  %v341_v5 = vld [vmem:[#allocation5 + $0x190] sm:$0xff]  ;;  %v385_v12 = vld [vmem:[#allocation7 + $0xe8] sm:$0xff]  ;;  %v346_v17 = vld [vmem:[#allocation5 + $0x1b8] sm:$0xff]  ;;  %v1928_v18 = vpack.c.bf16 %v367_v2, %v366_v1 }
  0x9b   : > { %v344_v15 = vld [vmem:[#allocation5 + $0x1a8] sm:$0xff]  ;;  %v1931_v21 = vpack.c.bf16 %v341_v5, %v339_v61  ;;  %v1934_v22 = vpack.c.bf16 %v385_v12, %v384_v10  ;;  %v368_v23 = vld [vmem:[#allocation7 + $0x60] sm:$0xff]  ;;  %v345_v35 = vld [vmem:[#allocation5 + $0x1b0] sm:$0xff] }
  0x9c   : > { %1206 = vmatpush1.bf16.msra.mxu0 %v1861_v44  ;;  %v369_v28 = vld [vmem:[#allocation7 + $0x68] sm:$0xff]  ;;  %v1937_v30 = vpack.c.bf16 %v346_v17, %v344_v15  ;;  %v343_v33 = vld [vmem:[#allocation5 + $0x1a0] sm:$0xff]  ;;  %v350_v39 = vld [vmem:[#allocation5 + $0x1d8] sm:$0xff] }
  0x9d   : > { %1208 = vmatprep.subr.bf16.mxu0 %v1864_v45  ;;  %1258 = vmatpush3.bf16.msra.mxu1 %v1904_v42  ;;  %v348_v36 = vld [vmem:[#allocation5 + $0x1c8] sm:$0xff]  ;;  %v1269_v40 = vpack.c.bf16 %v369_v28, %v368_v23  ;;  %v1941_v41 = vpack.c.bf16 %v345_v35, %v343_v33  ;;  %v347_v48 = vld [vmem:[#allocation5 + $0x1c0] sm:$0xff]  ;;  %v349_v49 = vld [vmem:[#allocation5 + $0x1d0] sm:$0xff] }
  0x9e   : > { %1260 = vmatprep.subr.bf16.mxu1 %v1910_v47  ;;  %v1945_v46 = vpack.c.bf16 %v350_v39, %v348_v36  ;;  %v352_v51 = vld [vmem:[#allocation5 + $0x1e8] sm:$0xff]  ;;  %v354_v52 = vld [vmem:[#allocation5 + $0x1f8] sm:$0xff]  ;;  %v1948_v53 = vpack.c.bf16 %v349_v49, %v347_v48  ;;  %v351_v55 = vld [vmem:[#allocation5 + $0x1e0] sm:$0xff] }
  0x9f   : > { %v1951_v54 = vpack.c.bf16 %v354_v52, %v352_v51  ;;  %v353_v61 = vld [vmem:[#allocation5 + $0x1f0] sm:$0xff]  ;;  %v389_v2 = vld [vmem:[%s1812_s16] sm:$0xff]  ;;  %v392_v5 = vld [vmem:[%s1812_s16 + $0x18] sm:$0xff] }
  0xa0   : > { %1210 = vmatpush1.bf16.msra.mxu0 %v1867_v56  ;;  %v1954_v1 = vpack.c.bf16 %v353_v61, %v351_v55  ;;  %v391_v10 = vld [vmem:[%s1812_s16 + $0x10] sm:$0xff]  ;;  %v394_v12 = vld [vmem:[%s1812_s16 + $0x28] sm:$0xff]  ;;  %v393_v15 = vld [vmem:[%s1812_s16 + $0x20] sm:$0xff] }
  0xa1   : > { %1212 = vmatprep.subr.bf16.mxu0 %v1874_v62  ;;  %1262 = vmatpush3.bf16.msra.mxu1 %v1916_v59  ;;  %v396_v17 = vld [vmem:[%s1812_s16 + $0x38] sm:$0xff]  ;;  %v355_v39 = vld [vmem:[%s2178_s2] sm:$0x3] }
  0xa2   : > { %1264 = vmatprep.subr.bf16.mxu1 %v1922_v0  ;;  %v404_v23 = vld [vmem:[%s1812_s16 + $0x78] sm:$0xff] }
  0xa3   : > { %v387_v28 = vld [vmem:[#allocation7 + $0xf8] sm:$0xff] }
  0xa4   : > { %1214 = vmatpush1.bf16.msra.mxu0 %v1883_v9  ;;  %v371_v35 = vld [vmem:[#allocation7 + $0x78] sm:$0xff] }
  0xa5   : > { %1216 = vmatprep.subr.bf16.mxu0 %v1889_v16  ;;  %1266 = vmatpush3.bf16.msra.mxu1 %v1928_v18 }
  0xa6   : > { %1268 = vmatprep.subr.bf16.mxu1 %v1934_v22 }
  0xa8   : > { %1218 = vmatpush1.bf16.msra.mxu0 %v1895_v27 }
  0xa9   : > { %1220 = vmatprep.subr.bf16.mxu0 %v1901_v34  ;;  %1270 = vmatpush3.bf16.msra.mxu1 %v1269_v40 }
  0xac   : > { %1222 = vmatpush1.bf16.msra.mxu0 %v1907_v43 }
  0xad   : > { %1224 = vmatprep.subr.bf16.mxu0 %v1913_v50 }
  0xb0   : > { %1226 = vmatpush1.bf16.msra.mxu0 %v1919_v60 }
  0xb1   : > { %1228 = vmatprep.subr.bf16.mxu0 %v1925_v4 }
  0xb4   : > { %1230 = vmatpush1.bf16.msra.mxu0 %v1931_v21 }
  0xb5   : > { %1232 = vmatprep.subr.bf16.mxu0 %v1937_v30 }
  0xb8   : > { %1234 = vmatpush1.bf16.msra.mxu0 %v1941_v41 }
  0xb9   : > { %1236 = vmatprep.subr.bf16.mxu0 %v1945_v46 }
  0xbc   : > { %1238 = vmatpush1.bf16.msra.mxu0 %v1948_v53 }
  0xbd   : > { %1240 = vmatprep.subr.bf16.mxu0 %v1951_v54 }
  0xc0   : > { %1242 = vmatpush1.bf16.msra.mxu0 %v1954_v1 }
  0xc1   : > { %1340 = vmatprep.subr.bf16.mxu0 %v1869_v57  ;;  %v395_v57 = vld [vmem:[%s1812_s16 + $0x30] sm:$0xff] }
  0xc3   : > { %481 = vmatmul.mubr.f32.vlgmr.msra.gmra.mrb[0].mxu0 %v389_v2 }
  0xc4   : > { %486 = vmatprep.mubr.f32.mxu0 %v392_v5  ;;  %1342 = vmatpush3.bf16.msra.mxu0 %v1871_v58  ;;  %v398_v58 = vld [vmem:[%s1812_s16 + $0x48] sm:$0xff] }
  0xc5   : > { %1344 = vmatprep.subr.bf16.mxu0 %v1876_v63  ;;  %v397_v63 = vld [vmem:[%s1812_s16 + $0x40] sm:$0xff] }
  0xc7   : > { %487 = vmatmul.mubr.f32.gmra.mrb[2].mxu0 %v391_v10 }
  0xc8   : > { %492 = vmatprep.mubr.f32.mxu0 %v394_v12  ;;  %1346 = vmatpush3.bf16.msra.mxu0 %v1880_v6  ;;  %v400_v6 = vld [vmem:[%s1812_s16 + $0x58] sm:$0xff] }
  0xc9   : > { %1348 = vmatprep.subr.bf16.mxu0 %v1886_v11  ;;  %v399_v11 = vld [vmem:[%s1812_s16 + $0x50] sm:$0xff] }
  0xcb   : > { %493 = vmatmul.mubr.f32.gmra.mrb[4].mxu0 %v393_v15 }
  0xcc   : > { %498 = vmatprep.mubr.f32.mxu0 %v396_v17  ;;  %1350 = vmatpush3.bf16.msra.mxu0 %v1892_v24  ;;  %v402_v24 = vld [vmem:[%s1812_s16 + $0x68] sm:$0xff] }
  0xcd   : > { %1352 = vmatprep.subr.bf16.mxu0 %v1898_v29  ;;  %v401_v29 = vld [vmem:[%s1812_s16 + $0x60] sm:$0xff] }
  0xcf   : > { %499 = vmatmul.mubr.f32.gmra.mrb[6].mxu0 %v395_v57 }
  0xd0   : > { %504 = vmatprep.mubr.f32.mxu0 %v398_v58  ;;  %1354 = vmatpush3.bf16.msra.mxu0 %v1904_v42  ;;  %v403_v42 = vld [vmem:[%s1812_s16 + $0x70] sm:$0xff] }
  0xd1   : > { %1356 = vmatprep.subr.bf16.mxu0 %v1910_v47  ;;  %v386_v47 = vld [vmem:[#allocation7 + $0xf0] sm:$0xff] }
  0xd2   : > { %v1271_v33 = vpack.c.bf16 %v387_v28, %v386_v47 }
  0xd3   : > { %505 = vmatmul.mubr.f32.gmra.mrb[8].mxu0 %v397_v63 }
  0xd4   : > { %510 = vmatprep.mubr.f32.mxu0 %v400_v6  ;;  %1358 = vmatpush3.bf16.msra.mxu0 %v1916_v59  ;;  %v370_v59 = vld [vmem:[#allocation7 + $0x70] sm:$0xff] }
  0xd5   : > { %1360 = vmatprep.subr.bf16.mxu0 %v1922_v0  ;;  %v1273_v36 = vpack.c.bf16 %v371_v35, %v370_v59  ;;  %1272 = vmatprep.subr.bf16.mxu1 %v1271_v33  ;;  %v406_v0 = vlaneseq }
  0xd7   : > { %511 = vmatmul.mubr.f32.gmra.mrb[10].mxu0 %v399_v11  ;;  %1274 = vmatpush3.bf16.msra.mxu1 %v1273_v36 }
  0xd8   : > { %516 = vmatprep.mubr.f32.mxu0 %v402_v24  ;;  %1362 = vmatpush3.bf16.msra.mxu0 %v1928_v18  ;;  %v407_v18 = vshrl.u32 %v406_v0, 7 }
  0xd9   : > { %1364 = vmatprep.subr.bf16.mxu0 %v1934_v22  ;;  %1276 = vmatprep.subr.bf16.mxu1 %v1822_v3 }
  0xda   : > { %v408_v22 = vsub.s32 0, %v407_v18 }
  0xdb   : > { %517 = vmatmul.mubr.f32.gmra.mrb[12].mxu0 %v401_v29 }
  0xdc   : > { %522 = vmatprep.mubr.f32.mxu0 %v404_v23  ;;  %1366 = vmatpush3.bf16.msra.mxu0 %v1269_v40  ;;  %v412_v40 = vsub.s32 1, %v407_v18  ;;  %v1990_v48 = vrot.slane %v355_v39, %v408_v22 }
  0xdd   : > { %1368 = vmatprep.subr.bf16.mxu0 %v1271_v33 }
  0xde   : > { %v1992_v49 = vrot.slane %v355_v39, %v412_v40 }
  0xdf   : > { %523 = vmatmul.mubr.f32.gmra.mrb[14].mxu0 %v403_v42 }
  0xe0   : > { %1370 = vmatpush3.bf16.msra.mxu0 %v1273_v36 }
 0x196   : > { %v482_v51 = vpop.f32.mrb[0].mxu0 }
 0x197   : > { %v483_v52 = vadd.f32 %v482_v51, %v1990_v48  ;;  %v484_v55 = vpop.f32.mrb[1].mxu0 }
 0x198   : > { %v485_v61 = vadd.f32 %v484_v55, %v1992_v49 }
 0x199   : > { %v529_v5 = vmax.f32 %v483_v52, 0.0 }
 0x19a   : > { %v530_v2 = vmax.f32 %v485_v61, 0.0  ;;  %v488_v3 = vpop.f32.mrb[2].mxu0 }
 0x19b   : > { %v489_v10 = vadd.f32 %v488_v3, %v1990_v48  ;;  %v490_v12 = vpop.f32.mrb[3].mxu0 }
 0x19c   : > { %615 = vmatprep.mubr.f32.mxu1 %v530_v2  ;;  %v491_v15 = vadd.f32 %v490_v12, %v1992_v49 }
 0x19d   : > { %616 = vmatmul.mubr.f32.vlgmr.msra.gmra.mrb[0].mxu1 %v529_v5  ;;  %v531_v17 = vmax.f32 %v489_v10, 0.0  ;;  %v665_v10 = vld [vmem:[%s1812_s16 + $0x88] sm:$0xff] }
 0x19e   : > { %1278 = vmatpush1.bf16.msra.mxu1 %v1824_v7  ;;  %v532_v57 = vmax.f32 %v491_v15, 0.0  ;;  %v494_v58 = vpop.f32.mrb[4].mxu0 }
 0x19f   : > { %1280 = vmatprep.subr.bf16.mxu1 %v1826_v8  ;;  %v495_v63 = vadd.f32 %v494_v58, %v1990_v48  ;;  %v496_v6 = vpop.f32.mrb[5].mxu0 }
 0x1a0   : > { %v497_v11 = vadd.f32 %v496_v6, %v1992_v49  ;;  %620 = vmatprep.mubr.f32.mxu1 %v532_v57 }
 0x1a1   : > { %v533_v24 = vmax.f32 %v495_v63, 0.0  ;;  %621 = vmatmul.mubr.f32.gmra.mrb[2].mxu1 %v531_v17 }
 0x1a2   : > { %1282 = vmatpush1.bf16.msra.mxu1 %v1830_v13  ;;  %v534_v29 = vmax.f32 %v497_v11, 0.0  ;;  %v500_v23 = vpop.f32.mrb[6].mxu0 }
 0x1a3   : > { %1284 = vmatprep.subr.bf16.mxu1 %v1833_v14  ;;  %v501_v7 = vadd.f32 %v500_v23, %v1990_v48  ;;  %v502_v42 = vpop.f32.mrb[7].mxu0 }
 0x1a4   : > { %v503_v47 = vadd.f32 %v502_v42, %v1992_v49  ;;  %625 = vmatprep.mubr.f32.mxu1 %v534_v29 }
 0x1a5   : > { %v535_v8 = vmax.f32 %v501_v7, 0.0  ;;  %626 = vmatmul.mubr.f32.gmra.mrb[4].mxu1 %v533_v24 }
 0x1a6   : > { %1286 = vmatpush1.bf16.msra.mxu1 %v1836_v19  ;;  %v536_v28 = vmax.f32 %v503_v47, 0.0  ;;  %v506_v33 = vpop.f32.mrb[8].mxu0 }
 0x1a7   : > { %1288 = vmatprep.subr.bf16.mxu1 %v1839_v20  ;;  %v507_v13 = vadd.f32 %v506_v33, %v1990_v48  ;;  %v508_v59 = vpop.f32.mrb[9].mxu0 }
 0x1a8   : > { %v509_v35 = vadd.f32 %v508_v59, %v1992_v49  ;;  %630 = vmatprep.mubr.f32.mxu1 %v536_v28 }
 0x1a9   : > { %v537_v14 = vmax.f32 %v507_v13, 0.0  ;;  %631 = vmatmul.mubr.f32.gmra.mrb[6].mxu1 %v535_v8 }
 0x1aa   : > { %1290 = vmatpush1.bf16.msra.mxu1 %v1842_v25  ;;  %v538_v36 = vmax.f32 %v509_v35, 0.0  ;;  %v512_v0 = vpop.f32.mrb[10].mxu0 }
 0x1ab   : > { %1292 = vmatprep.subr.bf16.mxu1 %v1845_v26  ;;  %v513_v19 = vadd.f32 %v512_v0, %v1990_v48  ;;  %v514_v18 = vpop.f32.mrb[11].mxu0 }
 0x1ac   : > { %v515_v22 = vadd.f32 %v514_v18, %v1992_v49  ;;  %635 = vmatprep.mubr.f32.mxu1 %v538_v36 }
 0x1ad   : > { %v539_v20 = vmax.f32 %v513_v19, 0.0  ;;  %636 = vmatmul.mubr.f32.gmra.mrb[8].mxu1 %v537_v14 }
 0x1ae   : > { %1294 = vmatpush1.bf16.msra.mxu1 %v1848_v31  ;;  %v540_v39 = vmax.f32 %v515_v22, 0.0  ;;  %v518_v40 = vpop.f32.mrb[12].mxu0 }
 0x1af   : > { %1296 = vmatprep.subr.bf16.mxu1 %v1851_v32  ;;  %v519_v25 = vadd.f32 %v518_v40, %v1990_v48  ;;  %v520_v51 = vpop.f32.mrb[13].mxu0 }
 0x1b0   : > { %v521_v52 = vadd.f32 %v520_v51, %v1992_v49  ;;  %640 = vmatprep.mubr.f32.mxu1 %v540_v39 }
 0x1b1   : > { %v541_v26 = vmax.f32 %v519_v25, 0.0  ;;  %641 = vmatmul.mubr.f32.gmra.mrb[10].mxu1 %v539_v20 }
 0x1b2   : > { %1298 = vmatpush1.bf16.msra.mxu1 %v1854_v37  ;;  %v542_v55 = vmax.f32 %v521_v52, 0.0  ;;  %v524_v61 = vpop.f32.mrb[14].mxu0  ;;  %v664_v37 = vld [vmem:[%s1812_s16 + $0x80] sm:$0xff] }
 0x1b3   : > { %1300 = vmatprep.subr.bf16.mxu1 %v1857_v38  ;;  %v525_v31 = vadd.f32 %v524_v61, %v1990_v48  ;;  %v526_v2 = vpop.f32.mrb[15].mxu0  ;;  %v667_v38 = vld [vmem:[%s1812_s16 + $0x98] sm:$0xff] }
 0x1b4   : > { %v527_v32 = vadd.f32 %v526_v2, %v1992_v49  ;;  %645 = vmatprep.mubr.f32.mxu1 %v542_v55 }
 0x1b5   : > { %v543_v3 = vmax.f32 %v525_v31, 0.0  ;;  %646 = vmatmul.mubr.f32.gmra.mrb[12].mxu1 %v541_v26 }
 0x1b6   : > { %1302 = vmatpush1.bf16.msra.mxu1 %v1861_v44  ;;  %v544_v5 = vmax.f32 %v527_v32, 0.0  ;;  %v666_v44 = vld [vmem:[%s1812_s16 + $0x90] sm:$0xff] }
 0x1b7   : > { %1304 = vmatprep.subr.bf16.mxu1 %v1864_v45  ;;  %v669_v45 = vld [vmem:[%s1812_s16 + $0xa8] sm:$0xff] }
 0x1b8   : > { %650 = vmatprep.mubr.f32.mxu1 %v544_v5 }
 0x1b9   : > { %651 = vmatmul.mubr.f32.gmra.mrb[14].mxu1 %v543_v3 }
 0x1ba   : > { %1306 = vmatpush1.bf16.msra.mxu1 %v1867_v56  ;;  %744 = vmatprep.mubr.f32.mxu1 %v665_v10  ;;  %v668_v56 = vld [vmem:[%s1812_s16 + $0xa0] sm:$0xff] }
 0x1bb   : > { %1308 = vmatprep.subr.bf16.mxu1 %v1874_v62  ;;  %v671_v62 = vld [vmem:[%s1812_s16 + $0xb8] sm:$0xff] }
 0x1be   : > { %1310 = vmatpush1.bf16.msra.mxu1 %v1883_v9  ;;  %v670_v9 = vld [vmem:[%s1812_s16 + $0xb0] sm:$0xff] }
 0x1bf   : > { %1312 = vmatprep.subr.bf16.mxu1 %v1889_v16  ;;  %v673_v16 = vld [vmem:[%s1812_s16 + $0xc8] sm:$0xff] }
 0x1c2   : > { %1314 = vmatpush1.bf16.msra.mxu1 %v1895_v27  ;;  %v672_v27 = vld [vmem:[%s1812_s16 + $0xc0] sm:$0xff] }
 0x1c3   : > { %1316 = vmatprep.subr.bf16.mxu1 %v1901_v34  ;;  %v675_v34 = vld [vmem:[%s1812_s16 + $0xd8] sm:$0xff] }
 0x1c6   : > { %1318 = vmatpush1.bf16.msra.mxu1 %v1907_v43  ;;  %v674_v43 = vld [vmem:[%s1812_s16 + $0xd0] sm:$0xff] }
 0x1c7   : > { %1320 = vmatprep.subr.bf16.mxu1 %v1913_v50  ;;  %v677_v50 = vld [vmem:[%s1812_s16 + $0xe8] sm:$0xff] }
 0x1ca   : > { %1322 = vmatpush1.bf16.msra.mxu1 %v1919_v60  ;;  %v676_v60 = vld [vmem:[%s1812_s16 + $0xe0] sm:$0xff] }
 0x1cb   : > { %1324 = vmatprep.subr.bf16.mxu1 %v1925_v4  ;;  %v679_v4 = vld [vmem:[%s1812_s16 + $0xf8] sm:$0xff] }
 0x1ce   : > { %1326 = vmatpush1.bf16.msra.mxu1 %v1931_v21  ;;  %v678_v21 = vld [vmem:[%s1812_s16 + $0xf0] sm:$0xff] }
 0x1cf   : > { %1328 = vmatprep.subr.bf16.mxu1 %v1937_v30 }
 0x1d2   : > { %1330 = vmatpush1.bf16.msra.mxu1 %v1941_v41  ;;  %v2061_v41 = vld [vmem:[%s2180_s4] ss:$0 sm:$0xff] }
 0x1d3   : > { %1332 = vmatprep.subr.bf16.mxu1 %v1945_v46 }
 0x1d6   : > { %1334 = vmatpush1.bf16.msra.mxu1 %v1948_v53 }
 0x1d7   : > { %1336 = vmatprep.subr.bf16.mxu1 %v1951_v54 }
 0x1da   : > { %1338 = vmatpush1.bf16.msra.mxu1 %v1954_v1 }
 0x1dd   : > { %745 = vmatmul.mubr.f32.vlgmr.msra.gmra.mrb[16].mxu1 %v664_v37 }
 0x1de   : > { %750 = vmatprep.mubr.f32.mxu1 %v667_v38 }
 0x1e1   : > { %751 = vmatmul.mubr.f32.gmra.mrb[18].mxu1 %v666_v44 }
 0x1e2   : > { %756 = vmatprep.mubr.f32.mxu1 %v669_v45 }
 0x1e5   : > { %757 = vmatmul.mubr.f32.gmra.mrb[20].mxu1 %v668_v56 }
 0x1e6   : > { %762 = vmatprep.mubr.f32.mxu1 %v671_v62 }
 0x1e9   : > { %763 = vmatmul.mubr.f32.gmra.mrb[22].mxu1 %v670_v9 }
 0x1ea   : > { %768 = vmatprep.mubr.f32.mxu1 %v673_v16 }
 0x1ed   : > { %769 = vmatmul.mubr.f32.gmra.mrb[24].mxu1 %v672_v27 }
 0x1ee   : > { %774 = vmatprep.mubr.f32.mxu1 %v675_v34 }
 0x1f1   : > { %775 = vmatmul.mubr.f32.gmra.mrb[26].mxu1 %v674_v43 }
 0x1f2   : > { %780 = vmatprep.mubr.f32.mxu1 %v677_v50 }
 0x1f5   : > { %781 = vmatmul.mubr.f32.gmra.mrb[28].mxu1 %v676_v60 }
 0x1f6   : > { %786 = vmatprep.mubr.f32.mxu1 %v679_v4 }
 0x1f9   : > { %787 = vmatmul.mubr.f32.gmra.mrb[30].mxu1 %v678_v21 }
 0x270   : > { %v1099_v30 = vpop.f32.mrb[0].mxu1 }
 0x271   : > { %v1100_v46 = vpop.f32.mrb[1].mxu1 }
 0x272   : > { %v1101_v53 = vadd.f32 %v1100_v46, %v1099_v30 }
 0x274   : > { %v618_v54 = vadd.f32 %v1101_v53, %v2061_v41  ;;  %v1102_v1 = vpop.f32.mrb[2].mxu1 }
 0x275   : > { %v1103_v12 = vpop.f32.mrb[3].mxu1 }
 0x276   : > { %656 = vst [vmem:[%s2064_s8] sm:$0xff] %v618_v54  ;;  %v1104_v15 = vadd.f32 %v1103_v12, %v1102_v1 }
 0x278   : > { %v623_v17 = vadd.f32 %v1104_v15, %v2061_v41  ;;  %v1105_v57 = vpop.f32.mrb[4].mxu1 }
 0x279   : > { %v1106_v58 = vpop.f32.mrb[5].mxu1 }
 0x27a   : > { %657 = vst [vmem:[%s2064_s8 + $0x8] sm:$0xff] %v623_v17  ;;  %v1107_v63 = vadd.f32 %v1106_v58, %v1105_v57 }
 0x27c   : > { %v628_v6 = vadd.f32 %v1107_v63, %v2061_v41  ;;  %v1108_v11 = vpop.f32.mrb[6].mxu1 }
 0x27d   : > { %v1109_v24 = vpop.f32.mrb[7].mxu1 }
 0x27e   : > { %658 = vst [vmem:[%s2064_s8 + $0x10] sm:$0xff] %v628_v6  ;;  %v1110_v29 = vadd.f32 %v1109_v24, %v1108_v11 }
 0x280   : > { %v633_v23 = vadd.f32 %v1110_v29, %v2061_v41  ;;  %v1111_v7 = vpop.f32.mrb[8].mxu1 }
 0x281   : > { %v1112_v42 = vpop.f32.mrb[9].mxu1 }
 0x282   : > { %659 = vst [vmem:[%s2064_s8 + $0x18] sm:$0xff] %v633_v23  ;;  %v1113_v47 = vadd.f32 %v1112_v42, %v1111_v7 }
 0x284   : > { %v638_v8 = vadd.f32 %v1113_v47, %v2061_v41  ;;  %v1114_v28 = vpop.f32.mrb[10].mxu1 }
 0x285   : > { %v1115_v33 = vpop.f32.mrb[11].mxu1 }
 0x286   : > { %660 = vst [vmem:[%s2064_s8 + $0x20] sm:$0xff] %v638_v8  ;;  %v1116_v13 = vadd.f32 %v1115_v33, %v1114_v28 }
 0x288   : > { %v643_v59 = vadd.f32 %v1116_v13, %v2061_v41  ;;  %v1117_v35 = vpop.f32.mrb[12].mxu1 }
 0x289   : > { %v1118_v14 = vpop.f32.mrb[13].mxu1 }
 0x28a   : > { %661 = vst [vmem:[%s2064_s8 + $0x28] sm:$0xff] %v643_v59  ;;  %v1119_v36 = vadd.f32 %v1118_v14, %v1117_v35 }
 0x28c   : > { %v648_v0 = vadd.f32 %v1119_v36, %v2061_v41  ;;  %v1120_v19 = vpop.f32.mrb[14].mxu1 }
 0x28d   : > { %v1121_v18 = vpop.f32.mrb[15].mxu1 }
 0x28e   : > { %662 = vst [vmem:[%s2064_s8 + $0x30] sm:$0xff] %v648_v0  ;;  %v1122_v22 = vadd.f32 %v1121_v18, %v1120_v19 }
 0x290   : > { %v653_v20 = vadd.f32 %v1122_v22, %v2061_v41 }
 0x292   : > { %663 = vst [vmem:[%s2064_s8 + $0x38] sm:$0xff] %v653_v20 }
 0x2b0   : > { %v746_v39 = vpop.f32.mrb[16].mxu1 }
 0x2b1   : > { %v747_v40 = vadd.f32 %v746_v39, %v1990_v48  ;;  %v748_v25 = vpop.f32.mrb[17].mxu1 }
 0x2b2   : > { %v749_v51 = vadd.f32 %v748_v25, %v1992_v49 }
 0x2b3   : > { %v793_v55 = vmax.f32 %v747_v40, 0.0 }
 0x2b4   : > { %v794_v52 = vmax.f32 %v749_v51, 0.0  ;;  %v752_v26 = vpop.f32.mrb[18].mxu1 }
 0x2b5   : > { %v753_v61 = vadd.f32 %v752_v26, %v1990_v48  ;;  %v754_v31 = vpop.f32.mrb[19].mxu1 }
 0x2b6   : > { %v755_v2 = vadd.f32 %v754_v31, %v1992_v49  ;;  %873 = vmatprep.mubr.f32.mxu0 %v794_v52 }
 0x2b7   : > { %874 = vmatmul.mubr.f32.vlgmr.msra.gmra.mrb[16].mxu0 %v793_v55  ;;  %v795_v5 = vmax.f32 %v753_v61, 0.0 }
 0x2b8   : > { %v796_v32 = vmax.f32 %v755_v2, 0.0  ;;  %v758_v3 = vpop.f32.mrb[20].mxu1 }
 0x2b9   : > { %v759_v10 = vadd.f32 %v758_v3, %v1990_v48  ;;  %v760_v37 = vpop.f32.mrb[21].mxu1 }
 0x2ba   : > { %v761_v38 = vadd.f32 %v760_v37, %v1992_v49  ;;  %878 = vmatprep.mubr.f32.mxu0 %v796_v32 }
 0x2bb   : > { %879 = vmatmul.mubr.f32.gmra.mrb[18].mxu0 %v795_v5  ;;  %v797_v56 = vmax.f32 %v759_v10, 0.0 }
 0x2bc   : > { %v798_v44 = vmax.f32 %v761_v38, 0.0  ;;  %v764_v45 = vpop.f32.mrb[22].mxu1 }
 0x2bd   : > { %v765_v62 = vadd.f32 %v764_v45, %v1990_v48  ;;  %v766_v9 = vpop.f32.mrb[23].mxu1 }
 0x2be   : > { %v767_v16 = vadd.f32 %v766_v9, %v1992_v49  ;;  %883 = vmatprep.mubr.f32.mxu0 %v798_v44 }
 0x2bf   : > { %884 = vmatmul.mubr.f32.gmra.mrb[20].mxu0 %v797_v56  ;;  %v799_v43 = vmax.f32 %v765_v62, 0.0 }
 0x2c0   : > { %v800_v27 = vmax.f32 %v767_v16, 0.0  ;;  %v770_v34 = vpop.f32.mrb[24].mxu1 }
 0x2c1   : > { %v771_v50 = vadd.f32 %v770_v34, %v1990_v48  ;;  %v772_v60 = vpop.f32.mrb[25].mxu1 }
 0x2c2   : > { %v773_v4 = vadd.f32 %v772_v60, %v1992_v49  ;;  %888 = vmatprep.mubr.f32.mxu0 %v800_v27 }
 0x2c3   : > { %889 = vmatmul.mubr.f32.gmra.mrb[22].mxu0 %v799_v43  ;;  %v801_v46 = vmax.f32 %v771_v50, 0.0 }
 0x2c4   : > { %v802_v21 = vmax.f32 %v773_v4, 0.0  ;;  %v776_v30 = vpop.f32.mrb[26].mxu1 }
 0x2c5   : > { %v777_v53 = vadd.f32 %v776_v30, %v1990_v48  ;;  %v778_v54 = vpop.f32.mrb[27].mxu1 }
 0x2c6   : > { %v779_v1 = vadd.f32 %v778_v54, %v1992_v49  ;;  %893 = vmatprep.mubr.f32.mxu0 %v802_v21 }
 0x2c7   : > { %894 = vmatmul.mubr.f32.gmra.mrb[24].mxu0 %v801_v46  ;;  %v803_v17 = vmax.f32 %v777_v53, 0.0 }
 0x2c8   : > { %v804_v12 = vmax.f32 %v779_v1, 0.0  ;;  %v782_v15 = vpop.f32.mrb[28].mxu1 }
 0x2c9   : > { %v783_v57 = vadd.f32 %v782_v15, %v1990_v48  ;;  %v784_v58 = vpop.f32.mrb[29].mxu1 }
 0x2ca   : > { %v785_v63 = vadd.f32 %v784_v58, %v1992_v49  ;;  %898 = vmatprep.mubr.f32.mxu0 %v804_v12 }
 0x2cb   : > { %899 = vmatmul.mubr.f32.gmra.mrb[26].mxu0 %v803_v17  ;;  %v805_v24 = vmax.f32 %v783_v57, 0.0 }
 0x2cc   : > { %v806_v6 = vmax.f32 %v785_v63, 0.0  ;;  %v788_v11 = vpop.f32.mrb[30].mxu1 }
 0x2cd   : > { %v789_v29 = vadd.f32 %v788_v11, %v1990_v48  ;;  %v790_v23 = vpop.f32.mrb[31].mxu1 }
 0x2ce   : > { %v791_v7 = vadd.f32 %v790_v23, %v1992_v49  ;;  %903 = vmatprep.mubr.f32.mxu0 %v806_v6 }
 0x2cf   : > { %904 = vmatmul.mubr.f32.gmra.mrb[28].mxu0 %v805_v24  ;;  %v807_v47 = vmax.f32 %v789_v29, 0.0 }
 0x2d0   : > { %v808_v42 = vmax.f32 %v791_v7, 0.0 }
 0x2d2   : > { %908 = vmatprep.mubr.f32.mxu0 %v808_v42 }
 0x2d3   : > { %909 = vmatmul.mubr.f32.gmra.mrb[30].mxu0 %v807_v47 }
 0x38a   : > { %v1155_v8 = vpop.f32.mrb[16].mxu0 }
 0x38b   : > { %v1156_v28 = vpop.f32.mrb[17].mxu0 }
 0x38c   : > { %v1157_v33 = vadd.f32 %v1156_v28, %v1155_v8 }
 0x38e   : > { %v876_v13 = vadd.f32 %v1157_v33, %v2061_v41  ;;  %v1158_v59 = vpop.f32.mrb[18].mxu0 }
 0x38f   : > { %v1159_v35 = vpop.f32.mrb[19].mxu0 }
 0x390   : > { %914 = vst [vmem:[%s2064_s8 + $0x40] sm:$0xff] %v876_v13  ;;  %v1160_v48 = vadd.f32 %v1159_v35, %v1158_v59 }
 0x392   : > { %v881_v49 = vadd.f32 %v1160_v48, %v2061_v41  ;;  %v1161_v14 = vpop.f32.mrb[20].mxu0 }
 0x393   : > { %v1162_v36 = vpop.f32.mrb[21].mxu0 }
 0x394   : > { %915 = vst [vmem:[%s2064_s8 + $0x48] sm:$0xff] %v881_v49  ;;  %v1163_v0 = vadd.f32 %v1162_v36, %v1161_v14 }
 0x396   : > { %v886_v19 = vadd.f32 %v1163_v0, %v2061_v41  ;;  %v1164_v18 = vpop.f32.mrb[22].mxu0 }
 0x397   : > { %v1165_v22 = vpop.f32.mrb[23].mxu0 }
 0x398   : > { %916 = vst [vmem:[%s2064_s8 + $0x50] sm:$0xff] %v886_v19  ;;  %v1166_v20 = vadd.f32 %v1165_v22, %v1164_v18 }
 0x39a   : > { %v891_v39 = vadd.f32 %v1166_v20, %v2061_v41  ;;  %v1167_v40 = vpop.f32.mrb[24].mxu0 }
 0x39b   : > { %v1168_v25 = vpop.f32.mrb[25].mxu0 }
 0x39c   : > { %917 = vst [vmem:[%s2064_s8 + $0x58] sm:$0xff] %v891_v39  ;;  %v1169_v51 = vadd.f32 %v1168_v25, %v1167_v40 }
 0x39e   : > { %v896_v52 = vadd.f32 %v1169_v51, %v2061_v41  ;;  %v1170_v26 = vpop.f32.mrb[26].mxu0 }
 0x39f   : > { %v1171_v55 = vpop.f32.mrb[27].mxu0 }
 0x3a0   : > { %918 = vst [vmem:[%s2064_s8 + $0x60] sm:$0xff] %v896_v52  ;;  %v1172_v61 = vadd.f32 %v1171_v55, %v1170_v26 }
 0x3a2   : > { %v901_v31 = vadd.f32 %v1172_v61, %v2061_v41  ;;  %v1173_v2 = vpop.f32.mrb[28].mxu0 }
 0x3a3   : > { %v1174_v32 = vpop.f32.mrb[29].mxu0 }
 0x3a4   : > { %919 = vst [vmem:[%s2064_s8 + $0x68] sm:$0xff] %v901_v31  ;;  %v1175_v3 = vadd.f32 %v1174_v32, %v1173_v2 }
 0x3a6   : > { %v906_v5 = vadd.f32 %v1175_v3, %v2061_v41  ;;  %v1176_v10 = vpop.f32.mrb[30].mxu0  ;;  %929 = sbr.rel (!%p2197_p9) target bundleno = 969 (0x3c9), region = 56 }
 0x3a7   : > { %v1177_v37 = vpop.f32.mrb[31].mxu0 }
 0x3a8   : > { %920 = vst [vmem:[%s2064_s8 + $0x70] sm:$0xff] %v906_v5  ;;  %v1178_v38 = vadd.f32 %v1177_v37, %v1176_v10 }
 0x3aa   : > { %v911_v44 = vadd.f32 %v1178_v38, %v2061_v41 }
 0x3ac   : > { %921 = vst [vmem:[%s2064_s8 + $0x78] sm:$0xff] %v911_v44 }
 0x3ad   : > { %s2207_s25 = smov (!%p932_p10, %s931_s25), 16 }
 0x3ae   : > { %s2117_s28 = sshll.u32 %s2207_s25, 7 }
 0x3af   : > { %s936_s26 = ssub.s32 2048, %s2117_s28 }
 0x3b0   : > { %937 = vsyncadd %s923_s17, %s936_s26  ;;  %p1057_p1 = scmp.ne.s32.totalorder %s2117_s28, 0  ;;  %s1066_s30 = sshll.u32 %s1658_s22, 11 }
 0x3b1   : > { %s2127_s14 = scalar_lea.hbm %s2181_s5, %s1066_s30  ;;  %s942_s15 = sshll.u32 %s2064_s8, 4  ;;  %s2130_s15 = int_to_ptr.vmem [resolvable:$true] %s942_s15 }
 0x3b2   : > { %s1523_s16 = scalar_lea.vmem %s2130_s15, %s2117_s28  ;;  %s1604_s29 = smov [#allocation8]  }
 0x3b3   : > { %p1524_p3 = scmp.ne.s32.totalorder %s2130_s15, %s1523_s16  ;;  %s1527_s7 = sshll.u32 %s1604_s29, 4  ;;  %s1528_s7 = int_to_ptr.vmem [resolvable:$false] %s1527_s7 }
 0x3b4   : > { %s1529_s22 = scalar_lea.vmem %s1528_s7, 4096  ;;  %p1530_p11 = scmp.lt.s32.totalorder %s2130_s15, %s1528_s7 }
 0x3b5   : > { %p1525_p5 = pnand %p1524_p3, %p1057_p1  ;;  %p1531_p13 = scmp.lt.s32.totalorder %s1529_s22, %s1523_s16 }
 0x3b7   : > { %p1526_p6 = pneg %p1525_p5  ;;  %p1532_p0 = por %p1531_p13, %p1530_p11 }
 0x3b9   : > { %p1533_p12 = pnand %p1532_p0, %p1526_p6 }
 0x3bb   : > { %1536 = shalt.err (!%p1533_p12)
}
 0x3bc   : > { %s1537_s10 = scalar_lea.hbm %s2127_s14, %s2117_s28  ;;  %s1541_s8 = scalar_lea.hbm %s2181_s5, 3200 }
 0x3bd   : > { %p1538_p7 = scmp.ne.s32.totalorder %s2127_s14, %s1537_s10  ;;  %p1542_p9 = scmp.lt.u32.totalorder %s2127_s14, %s2181_s5 }
 0x3be   : > { %p1543_p10 = scmp.lt.u32.totalorder %s1541_s8, %s1537_s10  ;;  %p1545_p5 = scmp.lt.u32.totalorder %s1537_s10, %s2127_s14 }
 0x3bf   : > { %p1539_p2 = pnand %p1538_p7, %p1057_p1 }
 0x3c0   : > { %p1544_p3 = por %p1543_p10, %p1542_p9 }
 0x3c1   : > { %p1540_p8 = pneg %p1539_p2 }
 0x3c2   : > { %p1546_p6 = por %p1545_p5, %p1544_p3 }
 0x3c4   : > { %p1547_p11 = pnand %p1546_p6, %p1540_p8 }
 0x3c6   : > { %1550 = shalt.err (!%p1547_p11)
}
 0x3c7   : > { %s1605_s26 = smov 128   ;;  %s1606_s30 = smov 8  }
 0x3c8   : > { %948 = dma.vmem_to_hbm [thread:$0]  (%p1057_p1), %s2130_s15, %s2117_s28, %s2127_s14, %s923_s17, %s1605_s26, %s1605_s26, %s1606_s30  }
 0x3c9 PF: > { %s957_s9 = sand.u32 1, %s1581_s18   ;;  %p2198_p13 = scmp.ne.s32.totalorder %s2189_s6, 0 }
 0x3ca   : > { %s958_s11 = scalar_lea.sflag [#allocation4], %s957_s9 }
 0x3cb   : > { %p1389_p0 = pnand %p1038_p4, %p2198_p13 }
 0x3cd   : > { %1576 = dma.done.wait (!%p1389_p0), %s958_s11, 2048  }
 0x3ce   : > { %1578 = vsyncadd (!%p1389_p0), %s958_s11, 4294965248  ;;  %s2199_s16 = sld [smem:[#allocation12_spill]]  ;;  %p19_p12 = scmp.ge.s32.totalorder %s1662_s24, 4  }
 0x3cf   : > { %s2200_s18 = smov %s1585_s19  ;;  %s2201_s19 = smov %s1589_s20 }
 0x3d0   : > { %s2203_s21 = smov %s1662_s24  ;;  %21 = sbr.rel (!%p19_p12) target bundleno = 6 (0x6), region = 93 }
 0x3d4   : > { %s2202_s20 = smov %s2199_s16 }
 0x3d7   :  { %963 = vsyncpa [#allocation3], 1 }
 0x3d8   :  { %965 = vsyncpa [#allocation3 + $0x1], 1 }
 0x3d9   :  { %966 = vsyncpa [#allocation6], 1 }
 0x3da   :  { %967 = vsyncpa [#allocation4], 1 }
 0x3db   :  { %969 = vsyncpa [#allocation4 + $0x1], 1 }

</bundles_post_ra>
